<compile_context>
chip_gen: v5e
topology: v5e:2x2
jax: 0.10.0
libtpu: 0.0.40
codegen_flags: <defaults>
</compile_context>

<pallas_src>
import functools

import jax
import jax.numpy as jnp
import numpy as np
from jax import lax
from jax.experimental import pallas as pl
from jax.experimental.pallas import tpu as pltpu


# --------------------------------------------------------------------------- #
# Kernels
# --------------------------------------------------------------------------- #
def _masked_layernorm_kernel(x_ref, gamma_ref, beta_ref, o_ref, *, eps):
    """Single-slab path. x_ref: (Bb, T, F); gamma/beta: (1, 1, F); o: (Bb, T, F).

    The block spans the FULL (T, F) extent, so the per-batch mask and mean
    reductions complete inside one grid step.
    """
    x = x_ref[...].astype(jnp.float32)            # (Bb, T, F)
    gamma = gamma_ref[...].astype(jnp.float32)    # (1, 1, F)
    beta = beta_ref[...].astype(jnp.float32)      # (1, 1, F)

    feat = x.shape[-1]

    # Padding mask: timesteps whose feature-sum is exactly zero.
    time_sums = jnp.sum(x, axis=2, keepdims=True)              # (Bb, T, 1)
    valid = (time_sums != 0.0).astype(jnp.float32)             # ~mask

    # Masked mean over all (t, f) elements of each batch entry.
    n_elements = jnp.sum(valid, axis=1, keepdims=True) * feat  # (Bb, 1, 1)
    total = jnp.sum(time_sums, axis=1, keepdims=True)          # (Bb, 1, 1)
    mean = total / n_elements                                  # (Bb, 1, 1)

    centered = (x - mean) * valid                              # (Bb, T, F)
    # Fused rsqrt: one EUP op, no materialized `var` slab.
    out = centered * lax.rsqrt(centered * centered + eps) * gamma + beta
    o_ref[...] = out.astype(o_ref.dtype)


def _stats_kernel(x_ref, mean_ref, sum_acc, cnt_acc, *, feat):
    """Two-pass path, pass 1: accumulate per-batch sum / valid-count across the
    T grid axis (last, 'arbitrary'); emit mean at the final T step.
    x_ref: (Bb, Tt, F); mean_ref / scratch: (Bb, 1, 1) f32.
    """
    t = pl.program_id(1)

    @pl.when(t == 0)
    def _():
        sum_acc[...] = jnp.zeros_like(sum_acc)
        cnt_acc[...] = jnp.zeros_like(cnt_acc)

    x = x_ref[...].astype(jnp.float32)                         # (Bb, Tt, F)
    time_sums = jnp.sum(x, axis=2, keepdims=True)              # (Bb, Tt, 1)
    valid = (time_sums != 0.0).astype(jnp.float32)
    sum_acc[...] += jnp.sum(time_sums, axis=1, keepdims=True)  # (Bb, 1, 1)
    cnt_acc[...] += jnp.sum(valid, axis=1, keepdims=True)      # (Bb, 1, 1)

    @pl.when(t == pl.num_programs(1) - 1)
    def _():
        mean_ref[...] = sum_acc[...] / (cnt_acc[...] * feat)


def _norm_kernel(mean_ref, x_ref, gamma_ref, beta_ref, o_ref, *, eps):
    """Two-pass path, pass 2: streaming normalize with precomputed mean."""
    x = x_ref[...].astype(jnp.float32)            # (Bb, Tt, F)
    mean = mean_ref[...]                          # (Bb, 1, 1) f32
    gamma = gamma_ref[...].astype(jnp.float32)
    beta = beta_ref[...].astype(jnp.float32)

    time_sums = jnp.sum(x, axis=2, keepdims=True)
    valid = (time_sums != 0.0).astype(jnp.float32)
    centered = (x - mean) * valid
    out = centered * lax.rsqrt(centered * centered + eps) * gamma + beta
    o_ref[...] = out.astype(o_ref.dtype)


# --------------------------------------------------------------------------- #
# Resource sizing
# --------------------------------------------------------------------------- #
def _vmem_capacity_bytes():
    """Per-generation VMEM capacity (v5e/v6e 128 MiB, v7x 64 MiB per core)."""
    try:
        cap = getattr(pltpu.get_tpu_info(), "vmem_capacity_bytes", None)
        if cap:
            return int(cap)
    except Exception:
        pass
    return 64 * 1024 * 1024  # conservative fallback (v7x per-TC)


def _footprint_bytes(bb, tt, feat, itemsize):
    """Estimated pipeline VMEM footprint of one grid step:
    double-buffered input + output blocks plus ~3 f32 temporaries
    (x cast, centered, out) and a little slack for gamma/beta/stats."""
    block = bb * tt * feat
    io = 2 * block * itemsize * 2          # in + out, x2 double-buffering
    temps = 3 * block * 4                  # f32 working set
    return io + temps + 8 * feat * 4 + 4096


def _vmem_limit(footprint, capacity):
    return int(min(capacity, max(2 * footprint, 32 * 1024 * 1024)))


def _pick_batch_tile(batch, seq, feat, itemsize, budget):
    """Largest divisor of `batch` whose pipeline footprint fits `budget`,
    capped so the grid keeps >= min(batch, 4) steps (v7x megacore split and
    DMA/compute overlap)."""
    per_item = _footprint_bytes(1, seq, feat, itemsize)
    bb = max(1, int(budget // per_item))
    bb = min(bb, max(1, batch // min(batch, 4)))
    bb = min(bb, batch)
    while batch % bb:
        bb -= 1
    return bb


def _pick_time_tile(seq, feat, itemsize, budget):
    """Largest divisor of `seq` that is a multiple of 8 (sublane-aligned) and
    whose (1, Tt, F) footprint fits the budget."""
    for cand in range(seq, 0, -1):
        if seq % cand:
            continue
        if cand != seq and cand % 8:
            continue
        if _footprint_bytes(1, cand, feat, itemsize) <= budget:
            return cand
    # TODO(synk): pad/mask partial T tiles for sequence lengths with no
    # sublane-aligned divisor that fits VMEM.
    return 8 if seq % 8 == 0 else 1


# --------------------------------------------------------------------------- #
# pallas_call wrappers
# --------------------------------------------------------------------------- #
def _layernorm_single_slab(x, gamma, beta, eps, bb, vmem_cap):
    batch, seq, feat = x.shape
    itemsize = jnp.dtype(x.dtype).itemsize
    footprint = _footprint_bytes(bb, seq, feat, itemsize)
    kernel = functools.partial(_masked_layernorm_kernel, eps=eps)
    return pl.pallas_call(
        kernel,
        out_shape=jax.ShapeDtypeStruct((batch, seq, feat), x.dtype),
        grid_spec=pltpu.PrefetchScalarGridSpec(
            num_scalar_prefetch=0,
            grid=(batch // bb,),
            in_specs=[
                pl.BlockSpec((bb, seq, feat), lambda b: (b, 0, 0)),
                pl.BlockSpec((1, 1, feat), lambda b: (0, 0, 0)),
                pl.BlockSpec((1, 1, feat), lambda b: (0, 0, 0)),
            ],
            out_specs=pl.BlockSpec((bb, seq, feat), lambda b: (b, 0, 0)),
        ),
        compiler_params=pltpu.CompilerParams(
            dimension_semantics=("parallel",),
            vmem_limit_bytes=_vmem_limit(footprint, vmem_cap)),
        cost_estimate=pl.CostEstimate(
            flops=10 * batch * seq * feat,
            transcendentals=batch * seq * feat,
            bytes_accessed=2 * batch * seq * feat * itemsize),
    )(x, gamma, beta)


def _layernorm_two_pass(x, gamma, beta, eps, bb, bt, vmem_cap):
    """Large-T path: pass 1 accumulates per-batch masked mean over T tiles,
    pass 2 streams the normalization."""
    batch, seq, feat = x.shape
    itemsize = jnp.dtype(x.dtype).itemsize
    nb, nt = batch // bb, seq // bt
    limit = _vmem_limit(_footprint_bytes(bb, bt, feat, itemsize), vmem_cap)

    mean = pl.pallas_call(
        functools.partial(_stats_kernel, feat=feat),
        out_shape=jax.ShapeDtypeStruct((batch, 1, 1), jnp.float32),
        grid_spec=pltpu.PrefetchScalarGridSpec(
            num_scalar_prefetch=0,
            grid=(nb, nt),
            in_specs=[pl.BlockSpec((bb, bt, feat), lambda b, t: (b, t, 0))],
            out_specs=pl.BlockSpec((bb, 1, 1), lambda b, t: (b, 0, 0)),
            scratch_shapes=[pltpu.VMEM((bb, 1, 1), jnp.float32),
                            pltpu.VMEM((bb, 1, 1), jnp.float32)],
        ),
        compiler_params=pltpu.CompilerParams(
            dimension_semantics=("parallel", "arbitrary"),
            vmem_limit_bytes=limit),
        cost_estimate=pl.CostEstimate(
            flops=3 * batch * seq * feat,
            transcendentals=0,
            bytes_accessed=batch * seq * feat * itemsize),
    )(x)

    return pl.pallas_call(
        functools.partial(_norm_kernel, eps=eps),
        out_shape=jax.ShapeDtypeStruct((batch, seq, feat), x.dtype),
        grid_spec=pltpu.PrefetchScalarGridSpec(
            num_scalar_prefetch=0,
            grid=(nb, nt),
            in_specs=[
                pl.BlockSpec((bb, 1, 1), lambda b, t: (b, 0, 0)),
                pl.BlockSpec((bb, bt, feat), lambda b, t: (b, t, 0)),
                pl.BlockSpec((1, 1, feat), lambda b, t: (0, 0, 0)),
                pl.BlockSpec((1, 1, feat), lambda b, t: (0, 0, 0)),
            ],
            out_specs=pl.BlockSpec((bb, bt, feat), lambda b, t: (b, t, 0)),
        ),
        compiler_params=pltpu.CompilerParams(
            dimension_semantics=("parallel", "parallel"),
            vmem_limit_bytes=limit),
        cost_estimate=pl.CostEstimate(
            flops=10 * batch * seq * feat,
            transcendentals=batch * seq * feat,
            bytes_accessed=2 * batch * seq * feat * itemsize),
    )(mean, x, gamma, beta)


@functools.partial(jax.jit, static_argnames=("eps",))
def masked_layernorm(x, gamma, beta, eps=1e-5):
    batch, seq, feat = x.shape
    gamma = jnp.reshape(gamma, (1, 1, feat))
    beta = jnp.reshape(beta, (1, 1, feat))
    itemsize = jnp.dtype(x.dtype).itemsize

    vmem_cap = _vmem_capacity_bytes()
    # Per-step footprint budget: stay well inside scoped VMEM on every
    # generation (>=2 MiB blocks are already near the HBM roofline).
    budget = min(vmem_cap // 4, 16 * 1024 * 1024)

    if _footprint_bytes(1, seq, feat, itemsize) <= budget:
        bb = _pick_batch_tile(batch, seq, feat, itemsize, budget)
        return _layernorm_single_slab(x, gamma, beta, eps, bb, vmem_cap)

    bt = _pick_time_tile(seq, feat, itemsize, budget)
    return _layernorm_two_pass(x, gamma, beta, eps, 1, bt, vmem_cap)


# ----------------------------- pure-JAX reference -----------------------------
def masked_layernorm_ref(x, gamma, beta, eps=1e-5):
    feat = x.shape[-1]
    time_sums = jnp.sum(x, axis=2)                      # (B, T)
    mask = time_sums == 0
    not_mask = (~mask).astype(x.dtype)[:, :, None]      # (B, T, 1)
    n_elements = jnp.sum(~mask, axis=1) * feat          # (B,)
    mean = jnp.sum(x, axis=(1, 2)) / n_elements         # (B,)
    centered = (x - mean[:, None, None]) * not_mask
    var = jnp.square(centered)
    return centered / jnp.sqrt(var + eps) * gamma + beta


# ------------------------------------ main ------------------------------------
if __name__ == "__main__":
    B, T, F = 4, 8, 128

    key = jax.random.PRNGKey(0)
    kx, kg, kb, kx2 = jax.random.split(key, 4)

    x = jax.random.normal(kx, (B, T, F), jnp.float32)
    # Zero out trailing timesteps per batch element so the mask
    # (feature-sum == 0) is actually exercised, like padded sequences.
    valid_lens = jnp.array([8, 5, 3, 6], dtype=jnp.int32)
    t_idx = jnp.arange(T)[None, :, None]                          # (1, T, 1)
    x = x * (t_idx < valid_lens[:, None, None]).astype(jnp.float32)

    gamma = 1.0 + 0.1 * jax.random.normal(kg, (1, 1, F), jnp.float32)
    beta = 0.1 * jax.random.normal(kb, (1, 1, F), jnp.float32)

    out = jax.block_until_ready(masked_layernorm(x, gamma, beta))
    ref = jax.block_until_ready(masked_layernorm_ref(x, gamma, beta))

    assert out.shape == (B, T, F), out.shape
    np.testing.assert_allclose(np.asarray(out), np.asarray(ref),
                               rtol=1e-4, atol=1e-5)
    # Masked (all-zero) timesteps must come out as beta.
    np.testing.assert_allclose(np.asarray(out[2, 3:]),
                               np.tile(np.asarray(beta[0]), (T - 3, 1)),
                               rtol=1e-4, atol=1e-5)

    # Exercise the large-T two-pass (T-tiled accumulator) path on small shapes.
    B2, T2 = 2, 16
    x2 = jax.random.normal(kx2, (B2, T2, F), jnp.float32)
    lens2 = jnp.array([16, 9], dtype=jnp.int32)
    x2 = x2 * (jnp.arange(T2)[None, :, None]
               < lens2[:, None, None]).astype(jnp.float32)
    out2 = jax.block_until_ready(
        _layernorm_two_pass(x2, gamma, beta, 1e-5, bb=1, bt=8,
                            vmem_cap=_vmem_capacity_bytes()))
    ref2 = jax.block_until_ready(masked_layernorm_ref(x2, gamma, beta))
    np.testing.assert_allclose(np.asarray(out2), np.asarray(ref2),
                               rtol=1e-4, atol=1e-5)

    print("KERNEL_OK")
</pallas_src>

<mosaic_0001>
module attributes {stable_mosaic.version = 11 : i64} {
  func.func @_masked_layernorm_kernel(%arg0: i32, %arg1: memref<1x8x128xf32, #tpu.memory_space<vmem>>, %arg2: memref<1x1x128xf32, #tpu.memory_space<vmem>>, %arg3: memref<1x1x128xf32, #tpu.memory_space<vmem>>, %arg4: memref<1x8x128xf32, #tpu.memory_space<vmem>>) attributes {dimension_semantics = [#tpu.dimension_semantics<parallel>], iteration_bounds = array<i64: 4>, scalar_prefetch = 0 : i64, scratch_operands = 0 : i64, tpu.core_type = #tpu.core_type<tc>, window_params = [{transform_indices = @transform_0, window_bounds = array<i64: 1, 8, 128>}, {pipeline_mode = #tpu.pipeline_mode<synchronous>, transform_indices = @transform_1, window_bounds = array<i64: 1, 1, 128>}, {pipeline_mode = #tpu.pipeline_mode<synchronous>, transform_indices = @transform_2, window_bounds = array<i64: 1, 1, 128>}, {transform_indices = @transform_3, window_bounds = array<i64: 1, 8, 128>}]} {
    %c0 = arith.constant 0 : index
    %c0_0 = arith.constant 0 : index
    %c0_1 = arith.constant 0 : index
    %0 = vector.load %arg1[%c0, %c0_0, %c0_1] : memref<1x8x128xf32, #tpu.memory_space<vmem>>, vector<1x8x128xf32>
    %c0_2 = arith.constant 0 : index
    %c0_3 = arith.constant 0 : index
    %c0_4 = arith.constant 0 : index
    %1 = vector.load %arg2[%c0_2, %c0_3, %c0_4] : memref<1x1x128xf32, #tpu.memory_space<vmem>>, vector<1x1x128xf32>
    %c0_5 = arith.constant 0 : index
    %c0_6 = arith.constant 0 : index
    %c0_7 = arith.constant 0 : index
    %2 = vector.load %arg3[%c0_5, %c0_6, %c0_7] : memref<1x1x128xf32, #tpu.memory_space<vmem>>, vector<1x1x128xf32>
    %cst = arith.constant dense<0.000000e+00> : vector<1x8xf32>
    %3 = vector.multi_reduction <add>, %0, %cst [2] : vector<1x8x128xf32> to vector<1x8xf32>
    %4 = vector.shape_cast %3 : vector<1x8xf32> to vector<1x8x1xf32>
    %cst_8 = arith.constant 0.000000e+00 : f32
    %5 = vector.broadcast %cst_8 : f32 to vector<1x8x1xf32>
    %6 = arith.cmpf one, %4, %5 : vector<1x8x1xf32>
    %7 = arith.extui %6 : vector<1x8x1xi1> to vector<1x8x1xi32>
    %8 = arith.sitofp %7 : vector<1x8x1xi32> to vector<1x8x1xf32>
    %cst_9 = arith.constant dense<0.000000e+00> : vector<1x1xf32>
    %9 = vector.multi_reduction <add>, %8, %cst_9 [1] : vector<1x8x1xf32> to vector<1x1xf32>
    %10 = vector.shape_cast %9 : vector<1x1xf32> to vector<1x1x1xf32>
    %cst_10 = arith.constant 1.280000e+02 : f32
    %11 = vector.broadcast %cst_10 : f32 to vector<1x1x1xf32>
    %12 = arith.mulf %10, %11 : vector<1x1x1xf32>
    %cst_11 = arith.constant dense<0.000000e+00> : vector<1x1xf32>
    %13 = vector.multi_reduction <add>, %4, %cst_11 [1] : vector<1x8x1xf32> to vector<1x1xf32>
    %14 = vector.shape_cast %13 : vector<1x1xf32> to vector<1x1x1xf32>
    %15 = arith.divf %14, %12 : vector<1x1x1xf32>
    %16 = vector.broadcast %15 : vector<1x1x1xf32> to vector<1x8x128xf32>
    %17 = arith.subf %0, %16 : vector<1x8x128xf32>
    %18 = vector.broadcast %8 : vector<1x8x1xf32> to vector<1x8x128xf32>
    %19 = arith.mulf %17, %18 : vector<1x8x128xf32>
    %20 = arith.mulf %19, %19 : vector<1x8x128xf32>
    %cst_12 = arith.constant 9.99999974E-6 : f32
    %21 = vector.broadcast %cst_12 : f32 to vector<1x8x128xf32>
    %22 = arith.addf %20, %21 : vector<1x8x128xf32>
    %23 = math.rsqrt %22 : vector<1x8x128xf32>
    %24 = arith.mulf %19, %23 : vector<1x8x128xf32>
    %25 = vector.broadcast %1 : vector<1x1x128xf32> to vector<1x8x128xf32>
    %26 = arith.mulf %24, %25 : vector<1x8x128xf32>
    %27 = vector.broadcast %2 : vector<1x1x128xf32> to vector<1x8x128xf32>
    %28 = arith.addf %26, %27 : vector<1x8x128xf32>
    %c0_13 = arith.constant 0 : index
    %c0_14 = arith.constant 0 : index
    %c0_15 = arith.constant 0 : index
    %29 = vector.load %arg4[%c0_13, %c0_14, %c0_15] : memref<1x8x128xf32, #tpu.memory_space<vmem>>, vector<1x8x128xf32>
    tpu.vector_store %arg4[%c0_13, %c0_14, %c0_15], %28 {strides = array<i32>} : memref<1x8x128xf32, #tpu.memory_space<vmem>>, vector<1x8x128xf32>,
    return
  }
  func.func @transform_0(%arg0: i32) -> (i32, i32, i32) {
    %c0_i32 = arith.constant 0 : i32
    %c0_i32_0 = arith.constant 0 : i32
    %c0_i32_1 = arith.constant 0 : i32
    return %arg0, %c0_i32, %c0_i32_0 : i32, i32, i32
  }
  func.func @transform_1(%arg0: i32) -> (i32, i32, i32) {
    %c0_i32 = arith.constant 0 : i32
    %c0_i32_0 = arith.constant 0 : i32
    %c0_i32_1 = arith.constant 0 : i32
    %c0_i32_2 = arith.constant 0 : i32
    return %c0_i32, %c0_i32_0, %c0_i32_1 : i32, i32, i32
  }
  func.func @transform_2(%arg0: i32) -> (i32, i32, i32) {
    %c0_i32 = arith.constant 0 : i32
    %c0_i32_0 = arith.constant 0 : i32
    %c0_i32_1 = arith.constant 0 : i32
    %c0_i32_2 = arith.constant 0 : i32
    return %c0_i32, %c0_i32_0, %c0_i32_1 : i32, i32, i32
  }
  func.func @transform_3(%arg0: i32) -> (i32, i32, i32) {
    %c0_i32 = arith.constant 0 : i32
    %c0_i32_0 = arith.constant 0 : i32
    %c0_i32_1 = arith.constant 0 : i32
    return %arg0, %c0_i32, %c0_i32_0 : i32, i32, i32
  }
}

</mosaic_0001>

<bundles_post_ra>
// kernel: masked_layernorm.1
= control target key start
LH: loop header
LB: loop body
LE: loop exit
PB: predicated region body
PF: predicated region fallthrough
CT: control target
= control target key end

     0   :  { %8 = vsyncpa [#allocation3], 0  ;;  %s735_s0 = inlined_call_operand.hbm [shape: f32[4,8,128], index: 0, kind: input, shape index: {}]   ;;  %s736_s1 = inlined_call_operand.hbm [shape: f32[1,1,128], index: 1, kind: input, shape index: {}]   ;;  %s737_s2 = inlined_call_operand.vmem [shape: f32[1,1,128], index: 2, kind: input, shape index: {}]   ;;  %s738_s3 = inlined_call_operand.hbm [shape: f32[4,8,128], index: 3, kind: output, shape index: {}]  }
   0x1   :  { %10 = vsyncpa [#allocation3 + $0x1], 0 }
   0x2   :  { %11 = vsyncpa [#allocation6], 0 }
   0x3   :  { %12 = vsyncpa [#allocation4], 0 }
   0x4   :  { %14 = vsyncpa [#allocation4 + $0x1], 0  ;;  %s592_s12 = smov 0   ;;  %s594_s13 = smov 0  }
   0x5   :  { %s596_s14 = smov 0   ;;  %s598_s15 = smov 0  }
   0x6 LB: > { %s613_s16 = sadd.s32 4294967295, %s568_s15   ;;  %s359_s17 = sadd.s32 4294967294, %s568_s15   ;;  %s568_s15 = sphi %s598_s15, %s747_s15   ;;  %s564_s14 = sphi %s596_s14, %s746_s14   ;;  %s560_s13 = sphi %s594_s13, %s745_s13   ;;  %s556_s12 = sphi %s592_s12, %s744_s12  }
   0x7   : > { %p40_p0 = scmp.ne.s32.totalorder %s560_s13, %s556_s12  ;;  %p41_p1 = scmp.eq.s32.totalorder %s613_s16, 0 }
   0x8   : > { %p106_p2 = scmp.eq.s32.totalorder %s613_s16, 3  ;;  %p112_p3 = scmp.eq.s32.totalorder %s359_s17, 3 }
   0x9   : > { %p622_p4 = por %p41_p1, %p40_p0  ;;  %p360_p5 = scmp.ge.s32.totalorder %s568_s15, 1 }
   0xa   : > { %p627_p6 = por %p112_p3, %p40_p0  ;;  %p119_p7 = scmp.lt.s32.totalorder %s568_s15, 5 }
   0xb   : > { %s131_s22 = sshll.u32 %s736_s1, 4  ;;  %s570_s24 = smov [#allocation5]   ;;  %s132_s22 = int_to_ptr.hbm [resolvable:$true] %s131_s22 }
   0xc   : > { %p635_p8 = pnand %p360_p5, %p119_p7  ;;  %s133_s25 = sshll.u32 %s570_s24, 4  ;;  %s134_s25 = int_to_ptr.vmem [resolvable:$true] %s133_s25 }
   0xd   : > { %s644_s26 = sadd.s32 1, %s568_s15   ;;  %s27_s27 = sadd.s32 1, %s564_s14 }
   0xe   : > { %p382_p9 = pneg %p635_p8  ;;  %s24_s28 = ssub.s32 %s568_s15, %s644_s26 }
   0xf   : > { %p25_p11 = scmp.eq.s32.totalorder %s24_s28, 0  ;;  %p34_p12 = scmp.ne.s32.totalorder %s564_s14, %s560_s13 }
  0x10   : > { %p383_p10 = pnand %p382_p9, %p41_p1  ;;  %p35_p13 = scmp.eq.s32.totalorder %s568_s15, 0 }
  0x11   : > { %s653_s29 = scalar_select %p25_p11, %s564_s14, %s27_s27  }
  0x12   : > { %385 = dma.hbm_to_vmem [thread:$0]  (!%p383_p10), %s132_s22, 16, %s134_s25, [#allocation6]  }
  0x13   : > { %p657_p0 = por %p106_p2, %p34_p12  ;;  %p395_p3 = scmp.lt.s32.totalorder %s568_s15, 4 }
  0x14   : > { %s147_s4 = sand.u32 1, %s564_s14   ;;  %s364_s5 = sshll.u32 %s568_s15, 3 }
  0x15   : > { %p36_p5 = por %p35_p13, %p34_p12  ;;  %s363_s6 = sshll.u32 %s147_s4, 3 }
  0x16   : > { %s155_s9 = scalar_lea.hbm %s735_s0, %s364_s5  ;;  %s151_s11 = scalar_lea.vmem [#allocation2], %s363_s6 }
  0x17   : > { %s157_s10 = sshll.u32 %s155_s9, 4  ;;  %s159_s17 = sshll.u32 %s151_s11, 4  ;;  %s158_s10 = int_to_ptr.hbm [resolvable:$true] %s157_s10  ;;  %s160_s17 = int_to_ptr.vmem [resolvable:$true] %s159_s17 }
  0x18   : > { %p667_p7 = pnand %p395_p3, %p36_p5  ;;  %s148_s21 = scalar_lea.sflag [#allocation3], %s147_s4 }
  0x19   : > { %s468_s22 = sshra.s32 %s158_s10, 4  ;;  %s475_s28 = scalar_lea.hbm %s735_s0, 32  ;;  %s469_s22 = int_to_ptr.hbm [resolvable:$true] %s468_s22 }
  0x1a   : > { %s470_s24 = scalar_lea.hbm %s469_s22, 8  ;;  %p472_p9 = pneg %p667_p7 }
  0x1b   : > { %p471_p2 = scmp.ne.s32.totalorder %s469_s22, %s470_s24  ;;  %p476_p12 = scmp.lt.s32.totalorder %s469_s22, %s735_s0 }
  0x1c   : > { %p477_p13 = scmp.lt.s32.totalorder %s475_s28, %s470_s24 }
  0x1d   : > { %p473_p10 = pnand %p472_p9, %p471_p2 }
  0x1e   : > { %p478_p3 = por %p477_p13, %p476_p12 }
  0x1f   : > { %p474_p11 = pneg %p473_p10 }
  0x21   : > { %p479_p5 = pnand %p478_p3, %p474_p11 }
  0x23   : > { %482 = shalt.err (!%p479_p5)
}
  0x24   : > { %389 = dma.hbm_to_vmem [thread:$0]  (!%p667_p7), %s158_s10, 128, %s160_s17, %s148_s21  }
  0x25   : > { %168 = sbr.rel (%p635_p8) target bundleno = 232 (0xe8), region = 32  ;;  %s684_s4 = sand.u32 (!%p635_p8), 1, %s560_s13  }
  0x26   : > { %s366_s7 = sshll.u32 (!%p635_p8), %s684_s4, 3  ;;  %s171_s8 = scalar_lea.sflag (!%p635_p8), [#allocation3], %s684_s4 }
  0x27   : > { %s174_s9 = scalar_lea.vmem (!%p635_p8), [#allocation2], %s366_s7 }
  0x2a   : > { %543 = dma.done.wait (%p622_p4), %s171_s8, 128  }
  0x2b   : > { %545 = vsyncadd (%p622_p4), %s171_s8, 4294967168 }
  0x2c   : > { %547 = dma.done.wait (%p41_p1), [#allocation6], 16  }
  0x2d   : > { %549 = vsyncadd (%p41_p1), [#allocation6], 4294967280  ;;  %v203_v0 = vld [vmem:[%s174_s9] sm:$0xff]  ;;  %v571_v2 = vmov 0.0   ;;  %s371_s18 = sshll.u32 %s613_s16, 3  ;;  %s202_s21 = scalar_lea.vmem [#allocation7], %s366_s7 }
  0x2e   : > { %206 = vadd.xlane.f32.xlu0 %v203_v0  ;;  %v432_v38 = vld [vmem:[#allocation5] ss:$0 sm:$0xff]  ;;  %s274_s11 = scalar_lea.hbm %s738_s3, %s371_s18  ;;  %v433_v41 = vld [vmem:[%s737_s2] ss:$0 sm:$0xff]  ;;  %s276_s22 = sshll.u32 %s202_s21, 4  ;;  %s277_s22 = int_to_ptr.vmem [resolvable:$true] %s276_s22 }
  0x2f   : > { %s278_s16 = sshll.u32 %s274_s11, 4  ;;  %s264_s24 = scalar_lea.sflag [#allocation4], %s684_s4  ;;  %s279_s16 = int_to_ptr.hbm [resolvable:$true] %s278_s16 }
  0x30   : > { %s512_s25 = sshra.s32 %s279_s16, 4  ;;  %s518_s6 = scalar_lea.hbm %s738_s3, 32  ;;  %s513_s25 = int_to_ptr.hbm [resolvable:$true] %s512_s25 }
  0x31   : > { %s514_s27 = scalar_lea.hbm %s513_s25, 8  ;;  %p519_p7 = scmp.lt.s32.totalorder %s513_s25, %s738_s3 }
  0x32   : > { %p515_p1 = scmp.ne.s32.totalorder %s513_s25, %s514_s27  ;;  %p520_p2 = scmp.lt.s32.totalorder %s518_s6, %s514_s27 }
  0x34   : > { %p516_p4 = pnand %p515_p1, %p657_p0  ;;  %p521_p9 = por %p520_p2, %p519_p7 }
  0x36   : > { %p517_p8 = pneg %p516_p4 }
  0x38   : > { %p522_p10 = pnand %p521_p9, %p517_p8 }
  0xa1   : > { %v207_v1 = vpop.xlane.xlu0 %206 }
  0xa2   : > { %vm208_vm0 = vcmp.ne.f32.partialorder %v207_v1, 0.0  ;;  %v218_v9 = vrot.slane %v207_v1, 4 }
  0xa3   : > { %v369_v3 = vsel %vm208_vm0, 1.0, %v571_v2 }
  0xa4   : > { %v211_v4 = vrot.slane %v369_v3, 4  ;;  %v219_v12 = vadd.f32 %v218_v9, %v207_v1 }
  0xa6   : > { %v212_v5 = vadd.f32 %v369_v3, %v211_v4  ;;  %v220_v13 = vrot.slane %v219_v12, 2 }
  0xa8   : > { %v213_v6 = vrot.slane %v212_v5, 2  ;;  %v221_v15 = vadd.f32 %v220_v13, %v219_v12 }
  0xaa   : > { %v214_v7 = vadd.f32 %v213_v6, %v212_v5  ;;  %v222_v19 = vrot.slane %v221_v15, 1 }
  0xac   : > { %v215_v8 = vrot.slane %v214_v7, 1  ;;  %v223_v24 = vadd.f32 %v222_v19, %v221_v15 }
  0xae   : > { %v216_v10 = vadd.f32 %v215_v8, %v214_v7 }
  0xb0   : > { %v217_v11 = vmul.f32 128.0, %v216_v10 }
  0xb2   : > { %434 = vrcp.f32 %v217_v11  ;;  %v235_v18 = vand.u32 2147483648, %v217_v11  ;;  %v233_v21 = vand.u32 2147483647, %v217_v11  ;;  %vm229_vm2 = vweird.f32 %v217_v11 }
  0xb4   : > { %v236_v23 = vor.u32 1.1754944e-38, %v235_v18  ;;  %vm234_vm4 = vcmp.eq.f32.partialorder %v233_v21, 8.507059e+37 }
  0xb8   : > { %v435_v14 = vpop.eup %434 }
  0xb9   : > { %v225_v16 = vmul.f32 %v435_v14, %v217_v11  ;;  %vm230_vm1 = vweird.f32 %v435_v14 }
  0xba   : > { %vm231_vm3 = vmor %vm229_vm2, %vm230_vm1 }
  0xbb   : > { %v226_v17 = vsub.f32 1.0, %v225_v16 }
  0xbd   : > { %v227_v20 = vmul.f32 %v435_v14, %v226_v17 }
  0xbf   : > { %v228_v22 = vadd.f32 %v435_v14, %v227_v20 }
  0xc1   : > { %v232_v25 = vsel %vm231_vm3, %v435_v14, %v228_v22 }
  0xc2   : > { %v237_v26 = vsel %vm234_vm4, %v236_v23, %v232_v25 }
  0xc3   : > { %v238_v27 = vmul.f32 %v237_v26, %v223_v24 }
  0xc5   : > { %v239_v28 = vsub.f32 %v203_v0, %v238_v27 }
  0xc7   : > { %v240_v29 = vmul.f32 %v369_v3, %v239_v28 }
  0xc9   : > { %v241_v30 = vmul.f32 %v240_v29, %v240_v29 }
  0xcb   : > { %v242_v31 = vadd.f32 1e-05, %v241_v30 }
  0xcd   : > { %436 = vrsqrt.f32 %v242_v31  ;;  %vm249_vm6 = vweird.f32 %v242_v31 }
  0xd3   : > { %v437_v32 = vpop.eup %436 }
  0xd4   : > { %v244_v33 = vmul.f32 %v437_v32, %v242_v31  ;;  %vm250_vm5 = vweird.f32 %v437_v32 }
  0xd5   : > { %vm251_vm7 = vmor %vm249_vm6, %vm250_vm5 }
  0xd6   : > { %v245_v34 = vmul.f32 %v437_v32, %v244_v33 }
  0xd8   : > { %v246_v35 = vmul.f32 0.5, %v245_v34 }
  0xda   : > { %v247_v36 = vsub.f32 1.5, %v246_v35 }
  0xdc   : > { %v248_v37 = vmul.f32 %v437_v32, %v247_v36 }
  0xde   : > { %v252_v39 = vsel %vm251_vm7, %v437_v32, %v248_v37 }
  0xdf   : > { %v253_v40 = vmul.f32 %v252_v39, %v240_v29 }
  0xe1   : > { %v257_v42 = vmul.f32 %v432_v38, %v253_v40 }
  0xe3   : > { %v261_v43 = vadd.f32 %v433_v41, %v257_v42 }
  0xe5   : > { %262 = vst [vmem:[%s202_s21] sm:$0xff] %v261_v43 }
  0xe6   : > { %525 = shalt.err (!%p522_p10)
}
  0xe7   : > { %380 = dma.vmem_to_hbm [thread:$0]  (%p657_p0), %s277_s22, 128, %s279_s16, %s264_s24  }
  0xe8 PF: > { %p397_p11 = scmp.ge.s32.totalorder %s568_s15, 2  ;;  %s290_s4 = sand.u32 1, %s556_s12  }
  0xe9   : > { %s291_s9 = scalar_lea.sflag [#allocation4], %s290_s4 }
  0xea   : > { %p391_p12 = pnand %p397_p11, %p627_p6 }
  0xec   : > { %p392_p13 = pneg %p391_p12 }
  0xee   : > { %551 = dma.done.wait (%p392_p13), %s291_s9, 128  }
  0xef   : > { %553 = vsyncadd (%p392_p13), %s291_s9, 4294967168  ;;  %p17_p3 = scmp.ge.s32.totalorder %s644_s26, 6   ;;  %s744_s12 = smov %s560_s13 }
  0xf0   : > { %s745_s13 = smov %s564_s14  ;;  %s746_s14 = smov %s653_s29 }
  0xf1   : > { %s747_s15 = smov %s644_s26  ;;  %19 = sbr.rel (!%p17_p3) target bundleno = 6 (0x6), region = 81 }
  0xf6   :  { %297 = vsyncpa [#allocation3], 1 }
  0xf7   :  { %299 = vsyncpa [#allocation3 + $0x1], 1 }
  0xf8   :  { %300 = vsyncpa [#allocation6], 1 }
  0xf9   :  { %301 = vsyncpa [#allocation4], 1 }
  0xfa   :  { %303 = vsyncpa [#allocation4 + $0x1], 1 }

</bundles_post_ra>
